<compile_context>
chip_gen: v5e
topology: v5e:2x2
jax: 0.10.0
libtpu: 0.0.40
codegen_flags: <defaults>
</compile_context>

<pallas_src>
import functools

import jax
import jax.numpy as jnp
import numpy as np
from jax import lax
from jax.experimental import pallas as pl
from jax.experimental.pallas import tpu as pltpu

LANE = 128  # lane width: pad contraction (9*Cin) and Cout to multiples of 128


def _round_up(x, m):
    return (x + m - 1) // m * m


def _vmem_config():
    """Per-chip VMEM working-set budget and scoped limit (v7x: 64 MiB/TC, v5e/v6e: 128 MiB)."""
    cap = 64 << 20
    try:
        info = pltpu.get_tpu_info()
        cap = int(getattr(info, "vmem_capacity_bytes", cap) or cap)
    except Exception:
        pass
    budget = max(4 << 20, cap // 4)            # tile-sizing budget (~16 MiB v7x, ~32 MiB v6e)
    vmem_limit = int(min(cap * 3 // 4, 100 << 20))
    return budget, vmem_limit


def _pick_row_tile(N, HW, k_pad, cout_p, itemsize, budget_bytes):
    """Largest multiple-of-8 divisor of H*W whose working set (double-buffered input + f32
    output, resident weights, f32 accumulator) fits the budget, while keeping >= 2 grid steps."""
    cands = [d for d in range(8, HW + 1, 8) if HW % d == 0]
    if not cands:
        cands = [HW]                            # full-dim block is always legal
    w_bytes = 2 * k_pad * cout_p * itemsize     # weights (double-buffered by default;
                                                # pl.Buffered(1) could halve this)

    def fits(tr):
        x_b = 2 * tr * k_pad * itemsize         # double-buffered im2col input tile
        o_b = 2 * tr * cout_p * 4               # double-buffered f32 output tile (phase 2)
        a_b = tr * cout_p * 4                   # in-kernel f32 accumulator
        return w_bytes + x_b + o_b + a_b <= budget_bytes

    fitting = [tr for tr in cands if fits(tr)]
    if not fitting:
        return cands[0]
    multi = [tr for tr in fitting if N * (HW // tr) >= 2]   # keep v7x megacore busy
    return max(multi) if multi else max(fitting)


def _stats_kernel(x_ref, w_ref, stats_ref):
    # x_ref    : (TR, K_pad)      im2col'd pixels (bf16), K = 9*Cin zero-padded to K_pad
    # w_ref    : (K_pad, Cout_p)  flattened conv weights (bf16), grid-resident
    # stats_ref: (2, Cout_p)      per-tile [mean, sum of squared deviations] (f32)
    acc = jnp.dot(x_ref[...], w_ref[...], preferred_element_type=jnp.float32)
    m = jnp.mean(acc, axis=0, keepdims=True)
    d = acc - m
    stats_ref[0:1, :] = m
    stats_ref[1:2, :] = jnp.sum(d * d, axis=0, keepdims=True)


def _conv_bn_relu_kernel(x_ref, w_ref, scale_ref, shift_ref, o_ref):
    # Recompute the (cheap) matmul and fuse BN scale/shift + ReLU; single lane-dense f32 store.
    acc = jnp.dot(x_ref[...], w_ref[...], preferred_element_type=jnp.float32)
    o_ref[...] = jnp.maximum(acc * scale_ref[...] + shift_ref[...], 0.0).astype(o_ref.dtype)


def conv_block(x_nchw, weight_oihw, gamma, beta, *,
               compute_dtype=jnp.bfloat16, row_tile=None):
    """x_nchw: (N, Cin, H, W); weight_oihw: (Cout, Cin, 3, 3); gamma/beta: (Cout,)."""
    N, Cin, H, W = x_nchw.shape
    Cout = weight_oihw.shape[0]
    HW = H * W
    K = 9 * Cin
    k_pad = _round_up(K, LANE)
    cout_p = _round_up(Cout, LANE)
    f32 = jnp.float32
    cdt = compute_dtype
    itemsize = jnp.dtype(cdt).itemsize

    budget, vmem_limit = _vmem_config()
    tr = row_tile if row_tile is not None else _pick_row_tile(N, HW, k_pad, cout_p, itemsize, budget)
    assert HW % tr == 0, "row_tile must divide H*W"
    n_t = HW // tr

    # ---- glue: NCHW->NHWC (bf16), pad=1, im2col over (kh,kw,ci), pad K to lane multiple ----
    x_nhwc = jnp.transpose(x_nchw, (0, 2, 3, 1)).astype(cdt)
    x_p = jnp.pad(x_nhwc, ((0, 0), (1, 1), (1, 1), (0, 0)))
    cols = [x_p[:, kh:kh + H, kw:kw + W, :] for kh in range(3) for kw in range(3)]
    x_cols = jnp.concatenate(cols, axis=-1)                                    # (N, H, W, 9*Cin)
    x_cols = jnp.pad(x_cols, ((0, 0), (0, 0), (0, 0), (0, k_pad - K)))
    x_cols = x_cols.reshape(N, HW, k_pad)                                      # (N, H*W, K_pad)

    # weights: (Cout,Cin,3,3) -> (kh,kw,ci) x co, zero-padded to (K_pad, Cout_p), bf16
    w_mat = jnp.transpose(weight_oihw, (2, 3, 1, 0)).reshape(K, Cout)
    w_mat = jnp.pad(w_mat, ((0, k_pad - K), (0, cout_p - Cout))).astype(cdt)

    params = pltpu.CompilerParams(
        dimension_semantics=("parallel", "parallel"),
        vmem_limit_bytes=vmem_limit)

    x_spec = pl.BlockSpec((None, tr, k_pad), lambda n, t: (n, t, 0))
    w_spec = pl.BlockSpec((k_pad, cout_p), lambda n, t: (0, 0))     # constant index -> resident

    # ---- phase 1: per-tile BN partials (tile mean + sum of squared deviations) ----
    stats = pl.pallas_call(
        _stats_kernel,
        grid=(N, n_t),
        in_specs=[x_spec, w_spec],
        out_specs=pl.BlockSpec((None, None, 2, cout_p), lambda n, t: (n, t, 0, 0)),
        out_shape=jax.ShapeDtypeStruct((N, n_t, 2, cout_p), f32),
        compiler_params=params,
    )(x_cols, w_mat)

    # ---- tiny XLA reduction: Chan-style combine -> biased batch stats over (N, H, W) ----
    tile_mean = stats[:, :, 0, :]                                   # (N, n_t, cout_p)
    tile_m2 = stats[:, :, 1, :]
    count = float(N * HW)
    mean = jnp.mean(tile_mean, axis=(0, 1))                         # equal tile sizes
    m2 = jnp.sum(tile_m2, axis=(0, 1)) + tr * jnp.sum((tile_mean - mean) ** 2, axis=(0, 1))
    var = jnp.maximum(m2 / count, 0.0)
    inv_std = lax.rsqrt(var + 1e-5)
    gamma_p = jnp.pad(gamma.astype(f32), (0, cout_p - Cout))
    beta_p = jnp.pad(beta.astype(f32), (0, cout_p - Cout))
    scale = (gamma_p * inv_std).reshape(1, cout_p)
    shift = (beta_p - mean * gamma_p * inv_std).reshape(1, cout_p)

    # ---- phase 2: recompute matmul, fused normalize + ReLU, write final f32 tensor once ----
    y = pl.pallas_call(
        _conv_bn_relu_kernel,
        grid=(N, n_t),
        in_specs=[x_spec, w_spec,
                  pl.BlockSpec((1, cout_p), lambda n, t: (0, 0)),
                  pl.BlockSpec((1, cout_p), lambda n, t: (0, 0))],
        out_specs=pl.BlockSpec((None, tr, cout_p), lambda n, t: (n, t, 0)),
        out_shape=jax.ShapeDtypeStruct((N, HW, cout_p), f32),
        compiler_params=params,
    )(x_cols, w_mat, scale, shift)

    # ---- final glue on the exact-size tensor: drop channel padding, back to NCHW ----
    y = y.reshape(N, H, W, cout_p)[..., :Cout]
    return jnp.transpose(y, (0, 3, 1, 2))


def _reference(x_nchw, weight_oihw, gamma, beta, op_dtype):
    """Pure-JAX reference (conv + train-mode BN + ReLU) with selectable operand precision."""
    conv = lax.conv_general_dilated(
        x_nchw.astype(op_dtype), weight_oihw.astype(op_dtype),
        window_strides=(1, 1), padding=((1, 1), (1, 1)),
        dimension_numbers=("NCHW", "OIHW", "NCHW"),
        preferred_element_type=jnp.float32)
    mean = jnp.mean(conv, axis=(0, 2, 3), keepdims=True)
    var = jnp.mean((conv - mean) ** 2, axis=(0, 2, 3), keepdims=True)
    y = (conv - mean) * lax.rsqrt(var + 1e-5) * gamma.reshape(1, -1, 1, 1) \
        + beta.reshape(1, -1, 1, 1)
    return jnp.maximum(y, 0.0)


if __name__ == "__main__":
    key = jax.random.PRNGKey(0)
    k_x, k_w, k_g, k_b = jax.random.split(key, 4)

    N, Cin, H, W = 2, 4, 16, 16
    Cout = 8

    x = jax.random.normal(k_x, (N, Cin, H, W), dtype=jnp.float32)
    weight = 0.1 * jax.random.normal(k_w, (Cout, Cin, 3, 3), dtype=jnp.float32)
    gamma = 1.0 + 0.1 * jax.random.normal(k_g, (Cout,), dtype=jnp.float32)
    beta = 0.1 * jax.random.normal(k_b, (Cout,), dtype=jnp.float32)

    ref_f32 = jax.block_until_ready(_reference(x, weight, gamma, beta, jnp.float32))
    ref_bf16 = jax.block_until_ready(_reference(x, weight, gamma, beta, jnp.bfloat16))

    # Default performance path: bf16 MXU operands, f32 accumulation/BN.
    out = jax.block_until_ready(jax.jit(conv_block)(x, weight, gamma, beta))
    assert out.shape == (N, Cout, H, W) and out.dtype == jnp.float32
    np.testing.assert_allclose(np.asarray(out), np.asarray(ref_bf16), rtol=2e-3, atol=2e-3)
    np.testing.assert_allclose(np.asarray(out), np.asarray(ref_f32), rtol=5e-2, atol=5e-2)

    # Multi-tile grid (exercises the per-tile Chan stats combine and halo-free tiling).
    out_tiled = jax.block_until_ready(
        jax.jit(functools.partial(conv_block, row_tile=64))(x, weight, gamma, beta))
    np.testing.assert_allclose(np.asarray(out_tiled), np.asarray(ref_bf16), rtol=2e-3, atol=2e-3)

    # f32 compute path: exact algorithmic check against the pure-f32 reference.
    out_f32 = jax.block_until_ready(
        jax.jit(functools.partial(conv_block, compute_dtype=jnp.float32))(x, weight, gamma, beta))
    np.testing.assert_allclose(np.asarray(out_f32), np.asarray(ref_f32), rtol=1e-4, atol=1e-4)

    print("KERNEL_OK")
</pallas_src>

<mosaic_0001>
module attributes {stable_mosaic.version = 11 : i64} {
  func.func @_stats_kernel(%arg0: i32, %arg1: i32, %arg2: memref<1x256x128xbf16, #tpu.memory_space<vmem>>, %arg3: memref<128x128xbf16, #tpu.memory_space<vmem>>, %arg4: memref<1x1x2x128xf32, #tpu.memory_space<vmem>>) attributes {dimension_semantics = [#tpu.dimension_semantics<parallel>, #tpu.dimension_semantics<parallel>], iteration_bounds = array<i64: 2, 1>, scalar_prefetch = 0 : i64, scratch_operands = 0 : i64, tpu.core_type = #tpu.core_type<tc>, window_params = [{transform_indices = @transform_0, window_bounds = array<i64: 1, 256, 128>}, {pipeline_mode = #tpu.pipeline_mode<synchronous>, transform_indices = @transform_1, window_bounds = array<i64: 128, 128>}, {transform_indices = @transform_2, window_bounds = array<i64: 1, 1, 2, 128>}]} {
    %c0 = arith.constant 0 : index
    %c0_0 = arith.constant 0 : index
    %c0_1 = arith.constant 0 : index
    %0 = vector.load %arg2[%c0, %c0_0, %c0_1] : memref<1x256x128xbf16, #tpu.memory_space<vmem>>, vector<1x256x128xbf16>
    %1 = vector.shape_cast %0 : vector<1x256x128xbf16> to vector<256x128xbf16>
    %c0_2 = arith.constant 0 : index
    %c0_3 = arith.constant 0 : index
    %2 = vector.load %arg3[%c0_2, %c0_3] : memref<128x128xbf16, #tpu.memory_space<vmem>>, vector<128x128xbf16>
    %cst = arith.constant dense<0.000000e+00> : vector<256x128xf32>
    %3 = tpu.matmul %1, %2, %cst {dimension_numbers = #tpu.dot_dimension_numbers<[1], [0], [0], [1], [0, 0, 1, 1], [], []>} : vector<256x128xbf16>, vector<128x128xbf16>, vector<256x128xf32> -> vector<256x128xf32>
    %cst_4 = arith.constant dense<0.000000e+00> : vector<128xf32>
    %4 = vector.multi_reduction <add>, %3, %cst_4 [0] : vector<256x128xf32> to vector<128xf32>
    %5 = vector.shape_cast %4 : vector<128xf32> to vector<1x128xf32>
    %cst_5 = arith.constant 2.560000e+02 : f32
    %6 = vector.broadcast %cst_5 : f32 to vector<1x128xf32>
    %7 = arith.divf %5, %6 : vector<1x128xf32>
    %8 = vector.broadcast %7 : vector<1x128xf32> to vector<256x128xf32>
    %9 = arith.subf %3, %8 : vector<256x128xf32>
    %c0_6 = arith.constant 0 : index
    %c0_7 = arith.constant 0 : index
    %c0_8 = arith.constant 0 : index
    %c0_9 = arith.constant 0 : index
    %10 = vector.load %arg4[%c0_6, %c0_7, %c0_8, %c0_9] : memref<1x1x2x128xf32, #tpu.memory_space<vmem>>, vector<1x1x1x128xf32>
    %11 = vector.shape_cast %10 : vector<1x1x1x128xf32> to vector<1x128xf32>
    %12 = vector.shape_cast %7 : vector<1x128xf32> to vector<1x1x1x128xf32>
    tpu.vector_store %arg4[%c0_6, %c0_7, %c0_8, %c0_9], %12 {strides = array<i32>} : memref<1x1x2x128xf32, #tpu.memory_space<vmem>>, vector<1x1x1x128xf32>,
    %13 = arith.mulf %9, %9 : vector<256x128xf32>
    %cst_10 = arith.constant dense<0.000000e+00> : vector<128xf32>
    %14 = vector.multi_reduction <add>, %13, %cst_10 [0] : vector<256x128xf32> to vector<128xf32>
    %15 = vector.shape_cast %14 : vector<128xf32> to vector<1x128xf32>
    %c0_11 = arith.constant 0 : index
    %c0_12 = arith.constant 0 : index
    %c1 = arith.constant 1 : index
    %c0_13 = arith.constant 0 : index
    %16 = vector.load %arg4[%c0_11, %c0_12, %c1, %c0_13] : memref<1x1x2x128xf32, #tpu.memory_space<vmem>>, vector<1x1x1x128xf32>
    %17 = vector.shape_cast %16 : vector<1x1x1x128xf32> to vector<1x128xf32>
    %18 = vector.shape_cast %15 : vector<1x128xf32> to vector<1x1x1x128xf32>
    tpu.vector_store %arg4[%c0_11, %c0_12, %c1, %c0_13], %18 {strides = array<i32>} : memref<1x1x2x128xf32, #tpu.memory_space<vmem>>, vector<1x1x1x128xf32>,
    return
  }
  func.func @transform_0(%arg0: i32, %arg1: i32) -> (i32, i32, i32) {
    %c0_i32 = arith.constant 0 : i32
    %c0_i32_0 = arith.constant 0 : i32
    return %arg0, %arg1, %c0_i32 : i32, i32, i32
  }
  func.func @transform_1(%arg0: i32, %arg1: i32) -> (i32, i32) {
    %c0_i32 = arith.constant 0 : i32
    %c0_i32_0 = arith.constant 0 : i32
    %c0_i32_1 = arith.constant 0 : i32
    return %c0_i32, %c0_i32_0 : i32, i32
  }
  func.func @transform_2(%arg0: i32, %arg1: i32) -> (i32, i32, i32, i32) {
    %c0_i32 = arith.constant 0 : i32
    %c0_i32_0 = arith.constant 0 : i32
    %c0_i32_1 = arith.constant 0 : i32
    return %arg0, %arg1, %c0_i32, %c0_i32_0 : i32, i32, i32, i32
  }
}

module attributes {stable_mosaic.version = 11 : i64} {
  func.func @_conv_bn_relu_kernel(%arg0: i32, %arg1: i32, %arg2: memref<1x256x128xbf16, #tpu.memory_space<vmem>>, %arg3: memref<128x128xbf16, #tpu.memory_space<vmem>>, %arg4: memref<1x128xf32, #tpu.memory_space<vmem>>, %arg5: memref<1x128xf32, #tpu.memory_space<vmem>>, %arg6: memref<1x256x128xf32, #tpu.memory_space<vmem>>) attributes {dimension_semantics = [#tpu.dimension_semantics<parallel>, #tpu.dimension_semantics<parallel>], iteration_bounds = array<i64: 2, 1>, scalar_prefetch = 0 : i64, scratch_operands = 0 : i64, tpu.core_type = #tpu.core_type<tc>, window_params = [{transform_indices = @transform_0, window_bounds = array<i64: 1, 256, 128>}, {pipeline_mode = #tpu.pipeline_mode<synchronous>, transform_indices = @transform_1, window_bounds = array<i64: 128, 128>}, {pipeline_mode = #tpu.pipeline_mode<synchronous>, transform_indices = @transform_2, window_bounds = array<i64: 1, 128>}, {pipeline_mode = #tpu.pipeline_mode<synchronous>, transform_indices = @transform_3, window_bounds = array<i64: 1, 128>}, {transform_indices = @transform_4, window_bounds = array<i64: 1, 256, 128>}]} {
    %c0 = arith.constant 0 : index
    %c0_0 = arith.constant 0 : index
    %c0_1 = arith.constant 0 : index
    %0 = vector.load %arg2[%c0, %c0_0, %c0_1] : memref<1x256x128xbf16, #tpu.memory_space<vmem>>, vector<1x256x128xbf16>
    %1 = vector.shape_cast %0 : vector<1x256x128xbf16> to vector<256x128xbf16>
    %c0_2 = arith.constant 0 : index
    %c0_3 = arith.constant 0 : index
    %2 = vector.load %arg3[%c0_2, %c0_3] : memref<128x128xbf16, #tpu.memory_space<vmem>>, vector<128x128xbf16>
    %cst = arith.constant dense<0.000000e+00> : vector<256x128xf32>
    %3 = tpu.matmul %1, %2, %cst {dimension_numbers = #tpu.dot_dimension_numbers<[1], [0], [0], [1], [0, 0, 1, 1], [], []>} : vector<256x128xbf16>, vector<128x128xbf16>, vector<256x128xf32> -> vector<256x128xf32>
    %c0_4 = arith.constant 0 : index
    %c0_5 = arith.constant 0 : index
    %4 = vector.load %arg4[%c0_4, %c0_5] : memref<1x128xf32, #tpu.memory_space<vmem>>, vector<1x128xf32>
    %5 = vector.broadcast %4 : vector<1x128xf32> to vector<256x128xf32>
    %6 = arith.mulf %3, %5 : vector<256x128xf32>
    %c0_6 = arith.constant 0 : index
    %c0_7 = arith.constant 0 : index
    %7 = vector.load %arg5[%c0_6, %c0_7] : memref<1x128xf32, #tpu.memory_space<vmem>>, vector<1x128xf32>
    %8 = vector.broadcast %7 : vector<1x128xf32> to vector<256x128xf32>
    %9 = arith.addf %6, %8 : vector<256x128xf32>
    %cst_8 = arith.constant 0.000000e+00 : f32
    %10 = vector.broadcast %cst_8 : f32 to vector<256x128xf32>
    %11 = arith.maximumf %9, %10 : vector<256x128xf32>
    %c0_9 = arith.constant 0 : index
    %c0_10 = arith.constant 0 : index
    %c0_11 = arith.constant 0 : index
    %12 = vector.load %arg6[%c0_9, %c0_10, %c0_11] : memref<1x256x128xf32, #tpu.memory_space<vmem>>, vector<1x256x128xf32>
    %13 = vector.shape_cast %12 : vector<1x256x128xf32> to vector<256x128xf32>
    %14 = vector.shape_cast %11 : vector<256x128xf32> to vector<1x256x128xf32>
    tpu.vector_store %arg6[%c0_9, %c0_10, %c0_11], %14 {strides = array<i32>} : memref<1x256x128xf32, #tpu.memory_space<vmem>>, vector<1x256x128xf32>,
    return
  }
  func.func @transform_0(%arg0: i32, %arg1: i32) -> (i32, i32, i32) {
    %c0_i32 = arith.constant 0 : i32
    %c0_i32_0 = arith.constant 0 : i32
    return %arg0, %arg1, %c0_i32 : i32, i32, i32
  }
  func.func @transform_1(%arg0: i32, %arg1: i32) -> (i32, i32) {
    %c0_i32 = arith.constant 0 : i32
    %c0_i32_0 = arith.constant 0 : i32
    %c0_i32_1 = arith.constant 0 : i32
    return %c0_i32, %c0_i32_0 : i32, i32
  }
  func.func @transform_2(%arg0: i32, %arg1: i32) -> (i32, i32) {
    %c0_i32 = arith.constant 0 : i32
    %c0_i32_0 = arith.constant 0 : i32
    %c0_i32_1 = arith.constant 0 : i32
    return %c0_i32, %c0_i32_0 : i32, i32
  }
  func.func @transform_3(%arg0: i32, %arg1: i32) -> (i32, i32) {
    %c0_i32 = arith.constant 0 : i32
    %c0_i32_0 = arith.constant 0 : i32
    %c0_i32_1 = arith.constant 0 : i32
    return %c0_i32, %c0_i32_0 : i32, i32
  }
  func.func @transform_4(%arg0: i32, %arg1: i32) -> (i32, i32, i32) {
    %c0_i32 = arith.constant 0 : i32
    %c0_i32_0 = arith.constant 0 : i32
    return %arg0, %arg1, %c0_i32 : i32, i32, i32
  }
}

</mosaic_0001>

<bundles_post_ra>
// kernel: conv_block.2
= control target key start
LH: loop header
LB: loop body
LE: loop exit
PB: predicated region body
PF: predicated region fallthrough
CT: control target
= control target key end

     0   :  { %s906_s9 = smov 0   ;;  %s908_s10 = smov 0   ;;  %s1156_s0 = inlined_call_operand.vmem [shape: bf16[2,256,128], index: 0, kind: input, shape index: {}]   ;;  %s1157_s1 = inlined_call_operand.vmem [shape: bf16[128,128], index: 1, kind: input, shape index: {}]   ;;  %s1158_s2 = inlined_call_operand.vmem [shape: f32[2,1,2,128], index: 2, kind: output, shape index: {}]  }
   0x1   :  { %s910_s11 = smov 0  }
   0x2 LB: > { %s24_s12 = sadd.s32 1, %s884_s10  ;;  %p688_p0 = scmp.ge.s32.totalorder %s888_s11, 1  ;;  %s888_s11 = sphi %s910_s11, %s12_s11   ;;  %s884_s10 = sphi %s908_s10, %s1160_s10   ;;  %s880_s9 = sphi %s906_s9, %s1159_s9  }
   0x3   : > { %p26_p1 = scmp.ge.s32.totalorder %s24_s12, 2  ;;  %p133_p2 = scmp.lt.s32.totalorder %s888_s11, 3 }
   0x5   : > { %s1162_s12 = smov (%p26_p1, %s24_s12), 0  ;;  %p134_p3 = pnand %p688_p0, %p133_p2 }
   0x6   : > { %p162_p4 = scmp.lt.s32.totalorder (!%p134_p3), %s880_s9, 1 }
   0x7   : > { %137 = sbr.rel (%p134_p3) target bundleno = 369 (0x171), region = 28 }
   0xc   : > { %v814_v0 = vld [vmem:[%s1157_s1 + $0x38] sm:$0xff]  ;;  %v813_v1 = vld [vmem:[%s1157_s1 + $0x30] sm:$0xff]  ;;  %v812_v2 = vld [vmem:[%s1157_s1 + $0x28] sm:$0xff]  ;;  %s1164_s9 = smov (!%p162_p4, %s880_s9), 1 }
   0xd   : > { %370 = vmatpush.bf16.msra.mxu0 %v814_v0  ;;  %815 = vmatpush.bf16.msra.mxu1 %v814_v0  ;;  %v811_v3 = vld [vmem:[%s1157_s1 + $0x20] sm:$0xff]  ;;  %v810_v4 = vld [vmem:[%s1157_s1 + $0x18] sm:$0xff]  ;;  %v809_v5 = vld [vmem:[%s1157_s1 + $0x10] sm:$0xff]  ;;  %s790_s27 = sshll.u32 %s1164_s9, 7  ;;  %s691_s5 = sshll.u32 %s1164_s9, 1 }
   0xe   : > { %816 = vmatpush.bf16.msra.mxu2 %v814_v0  ;;  %817 = vmatpush.bf16.msra.mxu3 %v814_v0  ;;  %v808_v6 = vld [vmem:[%s1157_s1 + $0x8] sm:$0xff]  ;;  %v807_v7 = vld [vmem:[%s1157_s1] sm:$0xff]  ;;  %s958_s4 = scalar_lea.vmem %s1156_s0, %s790_s27  ;;  %s1070_s8 = scalar_lea.vmem %s1158_s2, %s691_s5 }
   0xf   : > { %v791_v8 = vld [vmem:[%s958_s4] sm:$0xff]  ;;  %v792_v12 = vld [vmem:[%s958_s4 + $0x8] sm:$0xff]  ;;  %v793_v16 = vld [vmem:[%s958_s4 + $0x10] sm:$0xff] }
  0x10   : > { %v795_v9 = vld [vmem:[%s958_s4 + $0x20] sm:$0xff]  ;;  %v796_v13 = vld [vmem:[%s958_s4 + $0x28] sm:$0xff]  ;;  %v797_v17 = vld [vmem:[%s958_s4 + $0x30] sm:$0xff] }
  0x11   : > { %371 = vmatpush.bf16.msra.mxu0 %v813_v1  ;;  %818 = vmatpush.bf16.msra.mxu1 %v813_v1  ;;  %v799_v10 = vld [vmem:[%s958_s4 + $0x40] sm:$0xff]  ;;  %v800_v14 = vld [vmem:[%s958_s4 + $0x48] sm:$0xff]  ;;  %v801_v18 = vld [vmem:[%s958_s4 + $0x50] sm:$0xff] }
  0x12   : > { %819 = vmatpush.bf16.msra.mxu2 %v813_v1  ;;  %820 = vmatpush.bf16.msra.mxu3 %v813_v1  ;;  %v803_v11 = vld [vmem:[%s958_s4 + $0x60] sm:$0xff]  ;;  %v804_v15 = vld [vmem:[%s958_s4 + $0x68] sm:$0xff]  ;;  %v805_v19 = vld [vmem:[%s958_s4 + $0x70] sm:$0xff] }
  0x13   : > { %v794_v20 = vld [vmem:[%s958_s4 + $0x18] sm:$0xff] }
  0x14   : > { %v798_v21 = vld [vmem:[%s958_s4 + $0x38] sm:$0xff] }
  0x15   : > { %372 = vmatpush.bf16.msra.mxu0 %v812_v2  ;;  %821 = vmatpush.bf16.msra.mxu1 %v812_v2  ;;  %v802_v22 = vld [vmem:[%s958_s4 + $0x58] sm:$0xff] }
  0x16   : > { %822 = vmatpush.bf16.msra.mxu2 %v812_v2  ;;  %823 = vmatpush.bf16.msra.mxu3 %v812_v2  ;;  %v806_v23 = vld [vmem:[%s958_s4 + $0x78] sm:$0xff] }
  0x19   : > { %373 = vmatpush.bf16.msra.mxu0 %v811_v3  ;;  %824 = vmatpush.bf16.msra.mxu1 %v811_v3 }
  0x1a   : > { %825 = vmatpush.bf16.msra.mxu2 %v811_v3  ;;  %826 = vmatpush.bf16.msra.mxu3 %v811_v3 }
  0x1d   : > { %374 = vmatpush.bf16.msra.mxu0 %v810_v4  ;;  %827 = vmatpush.bf16.msra.mxu1 %v810_v4 }
  0x1e   : > { %828 = vmatpush.bf16.msra.mxu2 %v810_v4  ;;  %829 = vmatpush.bf16.msra.mxu3 %v810_v4 }
  0x21   : > { %375 = vmatpush.bf16.msra.mxu0 %v809_v5  ;;  %830 = vmatpush.bf16.msra.mxu1 %v809_v5 }
  0x22   : > { %831 = vmatpush.bf16.msra.mxu2 %v809_v5  ;;  %832 = vmatpush.bf16.msra.mxu3 %v809_v5 }
  0x25   : > { %376 = vmatpush.bf16.msra.mxu0 %v808_v6  ;;  %833 = vmatpush.bf16.msra.mxu1 %v808_v6 }
  0x26   : > { %834 = vmatpush.bf16.msra.mxu2 %v808_v6  ;;  %835 = vmatpush.bf16.msra.mxu3 %v808_v6 }
  0x29   : > { %377 = vmatpush.bf16.msra.mxu0 %v807_v7  ;;  %836 = vmatpush.bf16.msra.mxu1 %v807_v7 }
  0x2a   : > { %837 = vmatpush.bf16.msra.mxu2 %v807_v7  ;;  %838 = vmatpush.bf16.msra.mxu3 %v807_v7 }
  0x2c   : > { %378 = vmatmul.bf16.vlgmr.msra.gmra.mxu0 %v791_v8  ;;  %398 = vmatmul.bf16.vlgmr.msra.gmra.mxu1 %v795_v9 }
  0x2d   : > { %418 = vmatmul.bf16.vlgmr.msra.gmra.mxu2 %v799_v10  ;;  %438 = vmatmul.bf16.vlgmr.msra.gmra.mxu3 %v803_v11 }
  0x3c   : > { %383 = vmatmul.bf16.gmra.mxu0 %v792_v12  ;;  %403 = vmatmul.bf16.gmra.mxu1 %v796_v13 }
  0x3d   : > { %423 = vmatmul.bf16.gmra.mxu2 %v800_v14  ;;  %443 = vmatmul.bf16.gmra.mxu3 %v804_v15  ;;  %v890_v14 = vmov 256.0  }
  0x3e   : > { %864 = vrcp.f32 %v890_v14 }
  0x4c   : > { %388 = vmatmul.bf16.gmra.mxu0 %v793_v16  ;;  %408 = vmatmul.bf16.gmra.mxu1 %v797_v17 }
  0x4d   : > { %428 = vmatmul.bf16.gmra.mxu2 %v801_v18  ;;  %448 = vmatmul.bf16.gmra.mxu3 %v805_v19  ;;  %v865_v18 = vpop.eup %864 }
  0x4e   : > { %vm501_vm0 = vweird.f32 %v865_v18 }
  0x5c   : > { %393 = vmatmul.bf16.gmra.mxu0 %v794_v20  ;;  %413 = vmatmul.bf16.gmra.mxu1 %v798_v21  ;;  %v497_v21 = vmul.f32 256.0, %v865_v18 }
  0x5d   : > { %433 = vmatmul.bf16.gmra.mxu2 %v802_v22  ;;  %453 = vmatmul.bf16.gmra.mxu3 %v806_v23 }
  0xa9   : > { %v976_v24 = vpop.f32.mrf.mxu0  ;;  %v978_v25 = vpop.f32.mrf.mxu1 }
  0xb0   : > { %v986_v29 = vpop.f32.mrf.mxu2  ;;  %v998_v35 = vpop.f32.mrf.mxu3 }
  0xb1   : > { %v980_v26 = vpop.f32.mrf.mxu0  ;;  %v982_v27 = vpop.f32.mrf.mxu1 }
  0xb2   : > { %v459_v40 = vadd.f32 %v980_v26, %v976_v24 }
  0xb8   : > { %v992_v32 = vpop.f32.mrf.mxu2  ;;  %v1006_v39 = vpop.f32.mrf.mxu3 }
  0xb9   : > { %v984_v28 = vpop.f32.mrf.mxu0  ;;  %v988_v30 = vpop.f32.mrf.mxu1 }
  0xba   : > { %v460_v41 = vadd.f32 %v459_v40, %v984_v28 }
  0xc0   : > { %v1000_v36 = vpop.f32.mrf.mxu2  ;;  %v1020_v48 = vpop.f32.mrf.mxu3 }
  0xc1   : > { %v990_v31 = vpop.f32.mrf.mxu0  ;;  %v996_v34 = vpop.f32.mrf.mxu1 }
  0xc2   : > { %v461_v44 = vadd.f32 %v460_v41, %v990_v31  ;;  %v498_v41 = vsub.f32 1.0, %v497_v21 }
  0xc8   : > { %v1013_v43 = vpop.f32.mrf.mxu2  ;;  %v1033_v57 = vpop.f32.mrf.mxu3 }
  0xc9   : > { %v994_v33 = vpop.f32.mrf.mxu0  ;;  %v1004_v38 = vpop.f32.mrf.mxu1 }
  0xca   : > { %v462_v45 = vadd.f32 %v461_v44, %v994_v33 }
  0xd0   : > { %v1026_v52 = vpop.f32.mrf.mxu2  ;;  %v1044_v1 = vpop.f32.mrf.mxu3 }
  0xd1   : > { %v1002_v37 = vpop.f32.mrf.mxu0  ;;  %v1017_v46 = vpop.f32.mrf.mxu1 }
  0xd2   : > { %v463_v47 = vadd.f32 %v462_v45, %v1002_v37 }
  0xd8   : > { %v1037_v60 = vpop.f32.mrf.mxu2  ;;  %v1053_v8 = vpop.f32.mrf.mxu3 }
  0xd9   : > { %v1011_v42 = vpop.f32.mrf.mxu0  ;;  %v1030_v55 = vpop.f32.mrf.mxu1 }
  0xda   : > { %v464_v49 = vadd.f32 %v463_v47, %v1011_v42  ;;  %v499_v47 = vmul.f32 %v865_v18, %v498_v41 }
  0xe0   : > { %v1048_v4 = vpop.f32.mrf.mxu2  ;;  %v454_v16 = vpop.f32.mrf.mxu3 }
  0xe1   : > { %v1023_v50 = vpop.f32.mrf.mxu0  ;;  %v1041_v63 = vpop.f32.mrf.mxu1 }
  0xe2   : > { %v465_v51 = vadd.f32 %v464_v49, %v1023_v50 }
  0xe4   : > { %v466_v53 = vadd.f32 %v465_v51, %v978_v25 }
  0xe6   : > { %v467_v54 = vadd.f32 %v466_v53, %v982_v27  ;;  %v500_v53 = vadd.f32 %v865_v18, %v499_v47 }
  0xe8   : > { %v468_v56 = vadd.f32 %v467_v54, %v988_v30  ;;  %v1057_v11 = vpop.f32.mrf.mxu2  ;;  %v456_v40 = vpop.f32.mrf.mxu3 }
  0xea   : > { %v469_v58 = vadd.f32 %v468_v56, %v996_v34 }
  0xec   : > { %v470_v59 = vadd.f32 %v469_v58, %v1004_v38  ;;  %v502_v58 = vsel %vm501_vm0, %v865_v18, %v500_v53 }
  0xee   : > { %v471_v61 = vadd.f32 %v470_v59, %v1017_v46 }
  0xf0   : > { %v472_v62 = vadd.f32 %v471_v61, %v1030_v55 }
  0xf2   : > { %v473_v0 = vadd.f32 %v472_v62, %v1041_v63 }
  0xf4   : > { %v474_v2 = vadd.f32 %v473_v0, %v986_v29 }
  0xf6   : > { %v475_v3 = vadd.f32 %v474_v2, %v992_v32 }
  0xf8   : > { %v476_v5 = vadd.f32 %v475_v3, %v1000_v36 }
  0xfa   : > { %v477_v6 = vadd.f32 %v476_v5, %v1013_v43 }
  0xfc   : > { %v478_v7 = vadd.f32 %v477_v6, %v1026_v52 }
  0xfe   : > { %v479_v9 = vadd.f32 %v478_v7, %v1037_v60 }
 0x100   : > { %v480_v10 = vadd.f32 %v479_v9, %v1048_v4 }
 0x102   : > { %v481_v12 = vadd.f32 %v480_v10, %v1057_v11 }
 0x104   : > { %v482_v13 = vadd.f32 %v481_v12, %v998_v35 }
 0x106   : > { %v483_v15 = vadd.f32 %v482_v13, %v1006_v39 }
 0x108   : > { %v484_v17 = vadd.f32 %v483_v15, %v1020_v48 }
 0x10a   : > { %v485_v19 = vadd.f32 %v484_v17, %v1033_v57 }
 0x10c   : > { %v486_v20 = vadd.f32 %v485_v19, %v1044_v1 }
 0x10e   : > { %v487_v22 = vadd.f32 %v486_v20, %v1053_v8 }
 0x110   : > { %v488_v23 = vadd.f32 %v487_v22, %v454_v16 }
 0x112   : > { %v489_v44 = vadd.f32 %v488_v23, %v456_v40 }
 0x114   : > { %v490_v45 = vrot.slane %v489_v44, 4 }
 0x116   : > { %v491_v49 = vadd.f32 %v490_v45, %v489_v44 }
 0x118   : > { %v492_v51 = vrot.slane %v491_v49, 2 }
 0x11a   : > { %v493_v54 = vadd.f32 %v492_v51, %v491_v49 }
 0x11c   : > { %v494_v56 = vrot.slane %v493_v54, 1 }
 0x11e   : > { %v495_v59 = vadd.f32 %v494_v56, %v493_v54 }
 0x120   : > { %v1072_v61 = vmul.f32 %v502_v58, %v495_v59 }
 0x122   : > { %536 = vst [vmem:[%s1070_s8] sm:$0x1] %v1072_v61  ;;  %v1077_v62 = vsub.f32 %v454_v16, %v1072_v61  ;;  %v1080_v0 = vsub.f32 %v456_v40, %v1072_v61  ;;  %v504_v2 = vsub.f32 %v976_v24, %v1072_v61  ;;  %v505_v3 = vsub.f32 %v980_v26, %v1072_v61 }
 0x123   : > { %v506_v5 = vsub.f32 %v984_v28, %v1072_v61  ;;  %v507_v9 = vsub.f32 %v990_v31, %v1072_v61  ;;  %v508_v10 = vsub.f32 %v994_v33, %v1072_v61  ;;  %v509_v14 = vsub.f32 %v1002_v37, %v1072_v61 }
 0x124   : > { %v537_v6 = vmul.f32 %v504_v2, %v504_v2  ;;  %v538_v7 = vmul.f32 %v505_v3, %v505_v3  ;;  %v510_v26 = vsub.f32 %v1011_v42, %v1072_v61  ;;  %v511_v17 = vsub.f32 %v1023_v50, %v1072_v61 }
 0x125   : > { %v539_v12 = vmul.f32 %v506_v5, %v506_v5  ;;  %v540_v24 = vmul.f32 %v507_v9, %v507_v9  ;;  %v541_v16 = vmul.f32 %v508_v10, %v508_v10  ;;  %v542_v18 = vmul.f32 %v509_v14, %v509_v14 }
 0x126   : > { %v569_v13 = vadd.f32 %v538_v7, %v537_v6  ;;  %v512_v33 = vsub.f32 %v978_v25, %v1072_v61  ;;  %v543_v19 = vmul.f32 %v510_v26, %v510_v26  ;;  %v513_v37 = vsub.f32 %v982_v27, %v1072_v61 }
 0x127   : > { %v544_v21 = vmul.f32 %v511_v17, %v511_v17  ;;  %v514_v42 = vsub.f32 %v988_v30, %v1072_v61  ;;  %v515_v50 = vsub.f32 %v996_v34, %v1072_v61  ;;  %v516_v25 = vsub.f32 %v1004_v38, %v1072_v61 }
 0x128   : > { %v570_v15 = vadd.f32 %v569_v13, %v539_v12  ;;  %v545_v23 = vmul.f32 %v512_v33, %v512_v33  ;;  %v546_v41 = vmul.f32 %v513_v37, %v513_v37  ;;  %v517_v27 = vsub.f32 %v1017_v46, %v1072_v61 }
 0x129   : > { %v547_v45 = vmul.f32 %v514_v42, %v514_v42  ;;  %v548_v49 = vmul.f32 %v515_v50, %v515_v50  ;;  %v518_v30 = vsub.f32 %v1030_v55, %v1072_v61  ;;  %v549_v53 = vmul.f32 %v516_v25, %v516_v25 }
 0x12a   : > { %v571_v28 = vadd.f32 %v570_v15, %v540_v24  ;;  %v519_v34 = vsub.f32 %v1041_v63, %v1072_v61  ;;  %v550_v56 = vmul.f32 %v517_v27, %v517_v27  ;;  %v520_v38 = vsub.f32 %v986_v29, %v1072_v61 }
 0x12b   : > { %v551_v59 = vmul.f32 %v518_v30, %v518_v30  ;;  %v521_v46 = vsub.f32 %v992_v32, %v1072_v61  ;;  %v522_v55 = vsub.f32 %v1000_v36, %v1072_v61  ;;  %v523_v63 = vsub.f32 %v1013_v43, %v1072_v61 }
 0x12c   : > { %v572_v31 = vadd.f32 %v571_v28, %v541_v16  ;;  %v552_v3 = vmul.f32 %v519_v34, %v519_v34  ;;  %v553_v6 = vmul.f32 %v520_v38, %v520_v38  ;;  %v524_v29 = vsub.f32 %v1026_v52, %v1072_v61 }
 0x12d   : > { %v554_v9 = vmul.f32 %v521_v46, %v521_v46  ;;  %v555_v12 = vmul.f32 %v522_v55, %v522_v55  ;;  %v525_v32 = vsub.f32 %v1037_v60, %v1072_v61  ;;  %v556_v14 = vmul.f32 %v523_v63, %v523_v63 }
 0x12e   : > { %v573_v20 = vadd.f32 %v572_v31, %v542_v18  ;;  %v526_v36 = vsub.f32 %v1048_v4, %v1072_v61  ;;  %v557_v15 = vmul.f32 %v524_v29, %v524_v29  ;;  %v527_v43 = vsub.f32 %v1057_v11, %v1072_v61 }
 0x12f   : > { %v558_v16 = vmul.f32 %v525_v32, %v525_v32  ;;  %v528_v52 = vsub.f32 %v998_v35, %v1072_v61  ;;  %v529_v60 = vsub.f32 %v1006_v39, %v1072_v61  ;;  %v530_v4 = vsub.f32 %v1020_v48, %v1072_v61 }
 0x130   : > { %v574_v22 = vadd.f32 %v573_v20, %v543_v19  ;;  %v559_v17 = vmul.f32 %v526_v36, %v526_v36  ;;  %v560_v31 = vmul.f32 %v527_v43, %v527_v43  ;;  %v531_v11 = vsub.f32 %v1033_v57, %v1072_v61 }
 0x131   : > { %v561_v19 = vmul.f32 %v528_v52, %v528_v52  ;;  %v562_v37 = vmul.f32 %v529_v60, %v529_v60  ;;  %v532_v35 = vsub.f32 %v1044_v1, %v1072_v61  ;;  %v533_v39 = vsub.f32 %v1053_v8, %v1072_v61 }
 0x132   : > { %v575_v40 = vadd.f32 %v574_v22, %v544_v21  ;;  %v563_v22 = vmul.f32 %v530_v4, %v530_v4  ;;  %v567_v57 = vmul.f32 %v1077_v62, %v1077_v62 }
 0x133   : > { %v565_v50 = vmul.f32 %v532_v35, %v532_v35 }
 0x134   : > { %v576_v44 = vadd.f32 %v575_v40, %v545_v23  ;;  %v564_v23 = vmul.f32 %v531_v11, %v531_v11 }
 0x136   : > { %v577_v47 = vadd.f32 %v576_v44, %v546_v41  ;;  %v566_v41 = vmul.f32 %v533_v39, %v533_v39 }
 0x138   : > { %v578_v51 = vadd.f32 %v577_v47, %v547_v45  ;;  %v568_v45 = vmul.f32 %v1080_v0, %v1080_v0 }
 0x13a   : > { %v579_v54 = vadd.f32 %v578_v51, %v548_v49 }
 0x13c   : > { %v580_v58 = vadd.f32 %v579_v54, %v549_v53 }
 0x13e   : > { %v581_v2 = vadd.f32 %v580_v58, %v550_v56 }
 0x140   : > { %v582_v5 = vadd.f32 %v581_v2, %v551_v59 }
 0x142   : > { %v583_v7 = vadd.f32 %v582_v5, %v552_v3 }
 0x144   : > { %v584_v10 = vadd.f32 %v583_v7, %v553_v6 }
 0x146   : > { %v585_v13 = vadd.f32 %v584_v10, %v554_v9 }
 0x148   : > { %v586_v24 = vadd.f32 %v585_v13, %v555_v12 }
 0x14a   : > { %v587_v26 = vadd.f32 %v586_v24, %v556_v14 }
 0x14c   : > { %v588_v28 = vadd.f32 %v587_v26, %v557_v15 }
 0x14e   : > { %v589_v18 = vadd.f32 %v588_v28, %v558_v16 }
 0x150   : > { %v590_v33 = vadd.f32 %v589_v18, %v559_v17 }
 0x152   : > { %v591_v20 = vadd.f32 %v590_v33, %v560_v31 }
 0x154   : > { %v592_v21 = vadd.f32 %v591_v20, %v561_v19 }
 0x156   : > { %v593_v42 = vadd.f32 %v592_v21, %v562_v37 }
 0x158   : > { %v594_v40 = vadd.f32 %v593_v42, %v563_v22 }
 0x15a   : > { %v595_v48 = vadd.f32 %v594_v40, %v564_v23 }
 0x15c   : > { %v596_v44 = vadd.f32 %v595_v48, %v565_v50 }
 0x15e   : > { %v597_v25 = vadd.f32 %v596_v44, %v566_v41 }
 0x160   : > { %v598_v1 = vadd.f32 %v597_v25, %v567_v57 }
 0x162   : > { %v599_v47 = vadd.f32 %v598_v1, %v568_v45 }
 0x164   : > { %v600_v27 = vrot.slane %v599_v47, 4 }
 0x166   : > { %v601_v49 = vadd.f32 %v600_v27, %v599_v47 }
 0x168   : > { %v602_v51 = vrot.slane %v601_v49, 2 }
 0x16a   : > { %v603_v8 = vadd.f32 %v602_v51, %v601_v49 }
 0x16c   : > { %v604_v61 = vrot.slane %v603_v8, 1 }
 0x16e   : > { %v605_v30 = vadd.f32 %v604_v61, %v603_v8 }
 0x170   : > { %606 = vst [vmem:[%s1070_s8 + $0x1] sm:$0x1] %v605_v30 }
 0x171 PF: > { %s12_s11 = sadd.s32 1, %s888_s11   ;;  %s1159_s9 = smov %s884_s10 }
 0x172   : > { %p9_p5 = scmp.ge.s32.totalorder %s12_s11, 4   ;;  %s1160_s10 = smov %s1162_s12 }
 0x174   :  { %11 = sbr.rel (!%p9_p5) target bundleno = 2 (0x2), region = 58 }

// kernel: conv_block.3
= control target key start
LH: loop header
LB: loop body
LE: loop exit
PB: predicated region body
PF: predicated region fallthrough
CT: control target
= control target key end

     0   :  { %s973_s15 = smov 0   ;;  %s975_s16 = smov 0   ;;  %s1164_s0 = inlined_call_operand.vmem [shape: bf16[2,256,128], index: 0, kind: input, shape index: {}]   ;;  %s1165_s1 = inlined_call_operand.vmem [shape: bf16[128,128], index: 1, kind: input, shape index: {}]   ;;  %s1166_s2 = inlined_call_operand.vmem [shape: f32[1,128], index: 2, kind: input, shape index: {}]   ;;  %s1167_s3 = inlined_call_operand.vmem [shape: f32[1,128], index: 3, kind: input, shape index: {}]   ;;  %s1168_s4 = inlined_call_operand.vmem [shape: f32[2,256,128], index: 4, kind: output, shape index: {}]  }
   0x1   :  { %s977_s17 = smov 0  }
   0x2 LB: > { %s26_s18 = sadd.s32 1, %s942_s16  ;;  %p745_p0 = scmp.ge.s32.totalorder %s946_s17, 1  ;;  %s946_s17 = sphi %s977_s17, %s14_s17   ;;  %s942_s16 = sphi %s975_s16, %s1170_s16   ;;  %s938_s15 = sphi %s973_s15, %s1169_s15  }
   0x3   : > { %p28_p1 = scmp.ge.s32.totalorder %s26_s18, 2  ;;  %p183_p2 = scmp.lt.s32.totalorder %s946_s17, 3 }
   0x5   : > { %s1172_s18 = smov (%p28_p1, %s26_s18), 0  ;;  %p184_p3 = pnand %p745_p0, %p183_p2 }
   0x6   : > { %p218_p4 = scmp.lt.s32.totalorder (!%p184_p3), %s938_s15, 1 }
   0x7   : > { %187 = sbr.rel (%p184_p3) target bundleno = 241 (0xf1), region = 36 }
   0xc   : > { %v873_v0 = vld [vmem:[%s1165_s1 + $0x38] sm:$0xff]  ;;  %v872_v1 = vld [vmem:[%s1165_s1 + $0x30] sm:$0xff]  ;;  %v871_v2 = vld [vmem:[%s1165_s1 + $0x28] sm:$0xff]  ;;  %s1174_s15 = smov (!%p218_p4, %s938_s15), 1 }
   0xd   : > { %429 = vmatpush.bf16.msra.mxu0 %v873_v0  ;;  %874 = vmatpush.bf16.msra.mxu1 %v873_v0  ;;  %v870_v3 = vld [vmem:[%s1165_s1 + $0x20] sm:$0xff]  ;;  %v869_v4 = vld [vmem:[%s1165_s1 + $0x18] sm:$0xff]  ;;  %v868_v5 = vld [vmem:[%s1165_s1 + $0x10] sm:$0xff]  ;;  %s848_s7 = sshll.u32 %s1174_s15, 7  ;;  %s849_s21 = sshll.u32 %s1174_s15, 8 }
   0xe   : > { %875 = vmatpush.bf16.msra.mxu2 %v873_v0  ;;  %876 = vmatpush.bf16.msra.mxu3 %v873_v0  ;;  %v867_v6 = vld [vmem:[%s1165_s1 + $0x8] sm:$0xff]  ;;  %v866_v7 = vld [vmem:[%s1165_s1] sm:$0xff]  ;;  %s1025_s12 = scalar_lea.vmem %s1164_s0, %s848_s7  ;;  %s1061_s24 = scalar_lea.vmem %s1168_s4, %s849_s21 }
   0xf   : > { %v850_v8 = vld [vmem:[%s1025_s12] sm:$0xff]  ;;  %v851_v12 = vld [vmem:[%s1025_s12 + $0x8] sm:$0xff]  ;;  %v852_v16 = vld [vmem:[%s1025_s12 + $0x10] sm:$0xff] }
  0x10   : > { %v854_v9 = vld [vmem:[%s1025_s12 + $0x20] sm:$0xff]  ;;  %v855_v13 = vld [vmem:[%s1025_s12 + $0x28] sm:$0xff]  ;;  %v856_v17 = vld [vmem:[%s1025_s12 + $0x30] sm:$0xff] }
  0x11   : > { %430 = vmatpush.bf16.msra.mxu0 %v872_v1  ;;  %877 = vmatpush.bf16.msra.mxu1 %v872_v1  ;;  %v858_v10 = vld [vmem:[%s1025_s12 + $0x40] sm:$0xff]  ;;  %v859_v14 = vld [vmem:[%s1025_s12 + $0x48] sm:$0xff]  ;;  %v860_v18 = vld [vmem:[%s1025_s12 + $0x50] sm:$0xff] }
  0x12   : > { %878 = vmatpush.bf16.msra.mxu2 %v872_v1  ;;  %879 = vmatpush.bf16.msra.mxu3 %v872_v1  ;;  %v862_v11 = vld [vmem:[%s1025_s12 + $0x60] sm:$0xff]  ;;  %v863_v15 = vld [vmem:[%s1025_s12 + $0x68] sm:$0xff]  ;;  %v864_v19 = vld [vmem:[%s1025_s12 + $0x70] sm:$0xff] }
  0x13   : > { %v853_v20 = vld [vmem:[%s1025_s12 + $0x18] sm:$0xff]  ;;  %v1046_v24 = vld [vmem:[%s1166_s2] ss:$0 sm:$0xff] }
  0x14   : > { %v857_v21 = vld [vmem:[%s1025_s12 + $0x38] sm:$0xff]  ;;  %v1051_v25 = vld [vmem:[%s1167_s3] ss:$0 sm:$0xff] }
  0x15   : > { %431 = vmatpush.bf16.msra.mxu0 %v871_v2  ;;  %880 = vmatpush.bf16.msra.mxu1 %v871_v2  ;;  %v861_v22 = vld [vmem:[%s1025_s12 + $0x58] sm:$0xff] }
  0x16   : > { %881 = vmatpush.bf16.msra.mxu2 %v871_v2  ;;  %882 = vmatpush.bf16.msra.mxu3 %v871_v2  ;;  %v865_v23 = vld [vmem:[%s1025_s12 + $0x78] sm:$0xff] }
  0x19   : > { %432 = vmatpush.bf16.msra.mxu0 %v870_v3  ;;  %883 = vmatpush.bf16.msra.mxu1 %v870_v3 }
  0x1a   : > { %884 = vmatpush.bf16.msra.mxu2 %v870_v3  ;;  %885 = vmatpush.bf16.msra.mxu3 %v870_v3 }
  0x1d   : > { %433 = vmatpush.bf16.msra.mxu0 %v869_v4  ;;  %886 = vmatpush.bf16.msra.mxu1 %v869_v4 }
  0x1e   : > { %887 = vmatpush.bf16.msra.mxu2 %v869_v4  ;;  %888 = vmatpush.bf16.msra.mxu3 %v869_v4 }
  0x21   : > { %434 = vmatpush.bf16.msra.mxu0 %v868_v5  ;;  %889 = vmatpush.bf16.msra.mxu1 %v868_v5 }
  0x22   : > { %890 = vmatpush.bf16.msra.mxu2 %v868_v5  ;;  %891 = vmatpush.bf16.msra.mxu3 %v868_v5 }
  0x25   : > { %435 = vmatpush.bf16.msra.mxu0 %v867_v6  ;;  %892 = vmatpush.bf16.msra.mxu1 %v867_v6 }
  0x26   : > { %893 = vmatpush.bf16.msra.mxu2 %v867_v6  ;;  %894 = vmatpush.bf16.msra.mxu3 %v867_v6 }
  0x29   : > { %436 = vmatpush.bf16.msra.mxu0 %v866_v7  ;;  %895 = vmatpush.bf16.msra.mxu1 %v866_v7 }
  0x2a   : > { %896 = vmatpush.bf16.msra.mxu2 %v866_v7  ;;  %897 = vmatpush.bf16.msra.mxu3 %v866_v7 }
  0x2c   : > { %437 = vmatmul.bf16.vlgmr.msra.gmra.mxu0 %v850_v8  ;;  %457 = vmatmul.bf16.vlgmr.msra.gmra.mxu1 %v854_v9 }
  0x2d   : > { %477 = vmatmul.bf16.vlgmr.msra.gmra.mxu2 %v858_v10  ;;  %497 = vmatmul.bf16.vlgmr.msra.gmra.mxu3 %v862_v11 }
  0x3c   : > { %442 = vmatmul.bf16.gmra.mxu0 %v851_v12  ;;  %462 = vmatmul.bf16.gmra.mxu1 %v855_v13 }
  0x3d   : > { %482 = vmatmul.bf16.gmra.mxu2 %v859_v14  ;;  %502 = vmatmul.bf16.gmra.mxu3 %v863_v15 }
  0x4c   : > { %447 = vmatmul.bf16.gmra.mxu0 %v852_v16  ;;  %467 = vmatmul.bf16.gmra.mxu1 %v856_v17 }
  0x4d   : > { %487 = vmatmul.bf16.gmra.mxu2 %v860_v18  ;;  %507 = vmatmul.bf16.gmra.mxu3 %v864_v19 }
  0x5c   : > { %452 = vmatmul.bf16.gmra.mxu0 %v853_v20  ;;  %472 = vmatmul.bf16.gmra.mxu1 %v857_v21 }
  0x5d   : > { %492 = vmatmul.bf16.gmra.mxu2 %v861_v22  ;;  %512 = vmatmul.bf16.gmra.mxu3 %v865_v23 }
  0xa9   : > { %v438_v26 = vpop.f32.mrf.mxu0  ;;  %v458_v27 = vpop.f32.mrf.mxu1 }
  0xaa   : > { %v522_v28 = vmul.f32 %v1046_v24, %v438_v26  ;;  %v530_v29 = vmul.f32 %v1046_v24, %v458_v27 }
  0xac   : > { %v558_v30 = vadd.f32 %v1051_v25, %v522_v28  ;;  %v566_v31 = vadd.f32 %v1051_v25, %v530_v29 }
  0xae   : > { %v590_v32 = vmax.f32 %v558_v30, 0.0  ;;  %v598_v33 = vmax.f32 %v566_v31, 0.0 }
  0xb0   : > { %622 = vst [vmem:[%s1061_s24] sm:$0xff] %v590_v32  ;;  %v478_v34 = vpop.f32.mrf.mxu2  ;;  %v498_v35 = vpop.f32.mrf.mxu3 }
  0xb1   : > { %630 = vst [vmem:[%s1061_s24 + $0x40] sm:$0xff] %v598_v33  ;;  %v538_v36 = vmul.f32 %v1046_v24, %v478_v34  ;;  %v546_v37 = vmul.f32 %v1046_v24, %v498_v35  ;;  %v440_v38 = vpop.f32.mrf.mxu0  ;;  %v460_v39 = vpop.f32.mrf.mxu1 }
  0xb2   : > { %v523_v40 = vmul.f32 %v1046_v24, %v440_v38  ;;  %v531_v41 = vmul.f32 %v1046_v24, %v460_v39 }
  0xb3   : > { %v574_v42 = vadd.f32 %v1051_v25, %v538_v36  ;;  %v582_v43 = vadd.f32 %v1051_v25, %v546_v37 }
  0xb4   : > { %v559_v44 = vadd.f32 %v1051_v25, %v523_v40  ;;  %v567_v45 = vadd.f32 %v1051_v25, %v531_v41 }
  0xb5   : > { %v606_v46 = vmax.f32 %v574_v42, 0.0  ;;  %v614_v47 = vmax.f32 %v582_v43, 0.0 }
  0xb6   : > { %v591_v48 = vmax.f32 %v559_v44, 0.0  ;;  %v599_v49 = vmax.f32 %v567_v45, 0.0 }
  0xb7   : > { %638 = vst [vmem:[%s1061_s24 + $0x80] sm:$0xff] %v606_v46 }
  0xb8   : > { %646 = vst [vmem:[%s1061_s24 + $0xc0] sm:$0xff] %v614_v47  ;;  %v480_v50 = vpop.f32.mrf.mxu2  ;;  %v500_v51 = vpop.f32.mrf.mxu3 }
  0xb9   : > { %623 = vst [vmem:[%s1061_s24 + $0x8] sm:$0xff] %v591_v48  ;;  %v539_v52 = vmul.f32 %v1046_v24, %v480_v50  ;;  %v547_v53 = vmul.f32 %v1046_v24, %v500_v51  ;;  %v443_v54 = vpop.f32.mrf.mxu0  ;;  %v463_v55 = vpop.f32.mrf.mxu1 }
  0xba   : > { %631 = vst [vmem:[%s1061_s24 + $0x48] sm:$0xff] %v599_v49  ;;  %v524_v56 = vmul.f32 %v1046_v24, %v443_v54  ;;  %v532_v57 = vmul.f32 %v1046_v24, %v463_v55 }
  0xbb   : > { %v575_v58 = vadd.f32 %v1051_v25, %v539_v52  ;;  %v583_v59 = vadd.f32 %v1051_v25, %v547_v53 }
  0xbc   : > { %v560_v60 = vadd.f32 %v1051_v25, %v524_v56  ;;  %v568_v61 = vadd.f32 %v1051_v25, %v532_v57 }
  0xbd   : > { %v607_v62 = vmax.f32 %v575_v58, 0.0  ;;  %v615_v63 = vmax.f32 %v583_v59, 0.0 }
  0xbe   : > { %v592_v0 = vmax.f32 %v560_v60, 0.0  ;;  %v600_v1 = vmax.f32 %v568_v61, 0.0 }
  0xbf   : > { %639 = vst [vmem:[%s1061_s24 + $0x88] sm:$0xff] %v607_v62 }
  0xc0   : > { %647 = vst [vmem:[%s1061_s24 + $0xc8] sm:$0xff] %v615_v63  ;;  %v483_v2 = vpop.f32.mrf.mxu2  ;;  %v503_v3 = vpop.f32.mrf.mxu3 }
  0xc1   : > { %624 = vst [vmem:[%s1061_s24 + $0x10] sm:$0xff] %v592_v0  ;;  %v540_v4 = vmul.f32 %v1046_v24, %v483_v2  ;;  %v548_v5 = vmul.f32 %v1046_v24, %v503_v3  ;;  %v445_v6 = vpop.f32.mrf.mxu0  ;;  %v465_v7 = vpop.f32.mrf.mxu1 }
  0xc2   : > { %632 = vst [vmem:[%s1061_s24 + $0x50] sm:$0xff] %v600_v1  ;;  %v525_v8 = vmul.f32 %v1046_v24, %v445_v6  ;;  %v533_v9 = vmul.f32 %v1046_v24, %v465_v7 }
  0xc3   : > { %v576_v10 = vadd.f32 %v1051_v25, %v540_v4  ;;  %v584_v11 = vadd.f32 %v1051_v25, %v548_v5 }
  0xc4   : > { %v561_v12 = vadd.f32 %v1051_v25, %v525_v8  ;;  %v569_v13 = vadd.f32 %v1051_v25, %v533_v9 }
  0xc5   : > { %v608_v14 = vmax.f32 %v576_v10, 0.0  ;;  %v616_v15 = vmax.f32 %v584_v11, 0.0 }
  0xc6   : > { %v593_v16 = vmax.f32 %v561_v12, 0.0  ;;  %v601_v17 = vmax.f32 %v569_v13, 0.0 }
  0xc7   : > { %640 = vst [vmem:[%s1061_s24 + $0x90] sm:$0xff] %v608_v14 }
  0xc8   : > { %648 = vst [vmem:[%s1061_s24 + $0xd0] sm:$0xff] %v616_v15  ;;  %v485_v18 = vpop.f32.mrf.mxu2  ;;  %v505_v19 = vpop.f32.mrf.mxu3 }
  0xc9   : > { %625 = vst [vmem:[%s1061_s24 + $0x18] sm:$0xff] %v593_v16  ;;  %v541_v20 = vmul.f32 %v1046_v24, %v485_v18  ;;  %v549_v21 = vmul.f32 %v1046_v24, %v505_v19  ;;  %v448_v22 = vpop.f32.mrf.mxu0  ;;  %v468_v23 = vpop.f32.mrf.mxu1 }
  0xca   : > { %633 = vst [vmem:[%s1061_s24 + $0x58] sm:$0xff] %v601_v17  ;;  %v526_v26 = vmul.f32 %v1046_v24, %v448_v22  ;;  %v534_v27 = vmul.f32 %v1046_v24, %v468_v23 }
  0xcb   : > { %v577_v28 = vadd.f32 %v1051_v25, %v541_v20  ;;  %v585_v29 = vadd.f32 %v1051_v25, %v549_v21 }
  0xcc   : > { %v562_v30 = vadd.f32 %v1051_v25, %v526_v26  ;;  %v570_v31 = vadd.f32 %v1051_v25, %v534_v27 }
  0xcd   : > { %v609_v32 = vmax.f32 %v577_v28, 0.0  ;;  %v617_v33 = vmax.f32 %v585_v29, 0.0 }
  0xce   : > { %v594_v34 = vmax.f32 %v562_v30, 0.0  ;;  %v602_v35 = vmax.f32 %v570_v31, 0.0 }
  0xcf   : > { %641 = vst [vmem:[%s1061_s24 + $0x98] sm:$0xff] %v609_v32 }
  0xd0   : > { %649 = vst [vmem:[%s1061_s24 + $0xd8] sm:$0xff] %v617_v33  ;;  %v488_v36 = vpop.f32.mrf.mxu2  ;;  %v508_v37 = vpop.f32.mrf.mxu3 }
  0xd1   : > { %626 = vst [vmem:[%s1061_s24 + $0x20] sm:$0xff] %v594_v34  ;;  %v542_v38 = vmul.f32 %v1046_v24, %v488_v36  ;;  %v550_v39 = vmul.f32 %v1046_v24, %v508_v37  ;;  %v450_v40 = vpop.f32.mrf.mxu0  ;;  %v470_v41 = vpop.f32.mrf.mxu1 }
  0xd2   : > { %634 = vst [vmem:[%s1061_s24 + $0x60] sm:$0xff] %v602_v35  ;;  %v527_v42 = vmul.f32 %v1046_v24, %v450_v40  ;;  %v535_v43 = vmul.f32 %v1046_v24, %v470_v41 }
  0xd3   : > { %v578_v44 = vadd.f32 %v1051_v25, %v542_v38  ;;  %v586_v45 = vadd.f32 %v1051_v25, %v550_v39 }
  0xd4   : > { %v563_v46 = vadd.f32 %v1051_v25, %v527_v42  ;;  %v571_v47 = vadd.f32 %v1051_v25, %v535_v43 }
  0xd5   : > { %v610_v48 = vmax.f32 %v578_v44, 0.0  ;;  %v618_v49 = vmax.f32 %v586_v45, 0.0 }
  0xd6   : > { %v595_v50 = vmax.f32 %v563_v46, 0.0  ;;  %v603_v51 = vmax.f32 %v571_v47, 0.0 }
  0xd7   : > { %642 = vst [vmem:[%s1061_s24 + $0xa0] sm:$0xff] %v610_v48 }
  0xd8   : > { %650 = vst [vmem:[%s1061_s24 + $0xe0] sm:$0xff] %v618_v49  ;;  %v490_v52 = vpop.f32.mrf.mxu2  ;;  %v510_v53 = vpop.f32.mrf.mxu3 }
  0xd9   : > { %627 = vst [vmem:[%s1061_s24 + $0x28] sm:$0xff] %v595_v50  ;;  %v543_v54 = vmul.f32 %v1046_v24, %v490_v52  ;;  %v551_v55 = vmul.f32 %v1046_v24, %v510_v53  ;;  %v453_v56 = vpop.f32.mrf.mxu0  ;;  %v473_v57 = vpop.f32.mrf.mxu1 }
  0xda   : > { %635 = vst [vmem:[%s1061_s24 + $0x68] sm:$0xff] %v603_v51  ;;  %v528_v58 = vmul.f32 %v1046_v24, %v453_v56  ;;  %v536_v59 = vmul.f32 %v1046_v24, %v473_v57 }
  0xdb   : > { %v579_v60 = vadd.f32 %v1051_v25, %v543_v54  ;;  %v587_v61 = vadd.f32 %v1051_v25, %v551_v55 }
  0xdc   : > { %v564_v62 = vadd.f32 %v1051_v25, %v528_v58  ;;  %v572_v63 = vadd.f32 %v1051_v25, %v536_v59 }
  0xdd   : > { %v611_v0 = vmax.f32 %v579_v60, 0.0  ;;  %v619_v1 = vmax.f32 %v587_v61, 0.0 }
  0xde   : > { %v596_v2 = vmax.f32 %v564_v62, 0.0  ;;  %v604_v3 = vmax.f32 %v572_v63, 0.0 }
  0xdf   : > { %643 = vst [vmem:[%s1061_s24 + $0xa8] sm:$0xff] %v611_v0 }
  0xe0   : > { %651 = vst [vmem:[%s1061_s24 + $0xe8] sm:$0xff] %v619_v1  ;;  %v493_v4 = vpop.f32.mrf.mxu2  ;;  %v513_v5 = vpop.f32.mrf.mxu3 }
  0xe1   : > { %628 = vst [vmem:[%s1061_s24 + $0x30] sm:$0xff] %v596_v2  ;;  %v544_v6 = vmul.f32 %v1046_v24, %v493_v4  ;;  %v552_v7 = vmul.f32 %v1046_v24, %v513_v5  ;;  %v455_v8 = vpop.f32.mrf.mxu0  ;;  %v475_v9 = vpop.f32.mrf.mxu1 }
  0xe2   : > { %636 = vst [vmem:[%s1061_s24 + $0x70] sm:$0xff] %v604_v3  ;;  %v529_v10 = vmul.f32 %v1046_v24, %v455_v8  ;;  %v537_v11 = vmul.f32 %v1046_v24, %v475_v9 }
  0xe3   : > { %v580_v12 = vadd.f32 %v1051_v25, %v544_v6  ;;  %v588_v13 = vadd.f32 %v1051_v25, %v552_v7 }
  0xe4   : > { %v565_v14 = vadd.f32 %v1051_v25, %v529_v10  ;;  %v573_v15 = vadd.f32 %v1051_v25, %v537_v11 }
  0xe5   : > { %v612_v16 = vmax.f32 %v580_v12, 0.0  ;;  %v620_v17 = vmax.f32 %v588_v13, 0.0 }
  0xe6   : > { %v597_v18 = vmax.f32 %v565_v14, 0.0  ;;  %v605_v19 = vmax.f32 %v573_v15, 0.0 }
  0xe7   : > { %644 = vst [vmem:[%s1061_s24 + $0xb0] sm:$0xff] %v612_v16 }
  0xe8   : > { %652 = vst [vmem:[%s1061_s24 + $0xf0] sm:$0xff] %v620_v17  ;;  %v495_v20 = vpop.f32.mrf.mxu2  ;;  %v515_v21 = vpop.f32.mrf.mxu3 }
  0xe9   : > { %629 = vst [vmem:[%s1061_s24 + $0x38] sm:$0xff] %v597_v18  ;;  %v545_v22 = vmul.f32 %v1046_v24, %v495_v20  ;;  %v553_v23 = vmul.f32 %v1046_v24, %v515_v21 }
  0xea   : > { %637 = vst [vmem:[%s1061_s24 + $0x78] sm:$0xff] %v605_v19 }
  0xeb   : > { %v581_v26 = vadd.f32 %v1051_v25, %v545_v22  ;;  %v589_v27 = vadd.f32 %v1051_v25, %v553_v23 }
  0xed   : > { %v613_v28 = vmax.f32 %v581_v26, 0.0  ;;  %v621_v29 = vmax.f32 %v589_v27, 0.0 }
  0xef   : > { %645 = vst [vmem:[%s1061_s24 + $0xb8] sm:$0xff] %v613_v28 }
  0xf0   : > { %653 = vst [vmem:[%s1061_s24 + $0xf8] sm:$0xff] %v621_v29 }
  0xf1 PF: > { %s14_s17 = sadd.s32 1, %s946_s17   ;;  %s1169_s15 = smov %s942_s16 }
  0xf2   : > { %p11_p5 = scmp.ge.s32.totalorder %s14_s17, 4   ;;  %s1170_s16 = smov %s1172_s18 }
  0xf4   :  { %13 = sbr.rel (!%p11_p5) target bundleno = 2 (0x2), region = 66 }

</bundles_post_ra>
